<compile_context>
chip_gen: v6e
topology: v6e:2x2x1
jax: 0.10.0
libtpu: 0.0.40
codegen_flags: <defaults>
</compile_context>

<pallas_src>
import jax
import jax.numpy as jnp
from jax import lax
from jax.experimental import pallas as pl
from jax.experimental.pallas import tpu as pltpu


def _tag_kernel(x_ref, w_ref, b_ref, o_ref):
    # x_ref: (tm, H)  compute dtype (bf16/f32), streamed per grid step
    # w_ref: (Lp, H)  same dtype, label dim padded to Lp (multiple of 128), resident
    # b_ref: (Lp, 1)  f32, padded labels hold -1e30, resident
    # o_ref: (1, tm)  int32, lane-dense tag row
    # logits_T[l, t] = sum_h w[l,h] * x[t,h]  -> (Lp, tm); NT dot (contract last dims)
    logits = lax.dot_general(
        w_ref[...], x_ref[...],
        dimension_numbers=(((1,), (1,)), ((), ())),
        preferred_element_type=jnp.float32,
    )
    logits = logits + b_ref[...]                       # bias broadcast over tokens (lanes)
    lp = logits.shape[0]
    mx = jnp.max(logits, axis=0, keepdims=True)        # (1, tm) per-token max over labels
    row = lax.broadcasted_iota(jnp.int32, logits.shape, 0)
    # first-occurrence argmax (matches torch.max / jnp.argmax tie-breaking)
    tag = jnp.min(jnp.where(logits >= mx, row, jnp.int32(lp)),
                  axis=0, keepdims=True)               # (1, tm) int32, lane-dense
    o_ref[...] = tag


def prepare_tag_head(w, b, compute_dtype=jnp.bfloat16, lanes=128):
    """One-time prep of an nn.Linear(H, L) head for the kernel.

    Pads the label dim to a multiple of 128 lanes and casts the weight to the
    encoder's compute dtype. Padded labels get bias -1e30 (finite) so they can
    never win the argmax.
    """
    L, H = w.shape
    Lp = pl.cdiv(L, lanes) * lanes
    wp = jnp.zeros((Lp, H), compute_dtype).at[:L].set(jnp.asarray(w, compute_dtype))
    bp = jnp.full((Lp, 1), -1e30, jnp.float32).at[:L, 0].set(jnp.asarray(b, jnp.float32))
    return wp, bp


def _pick_row_tile(bs, h, itemsize, tm_max=1024, vmem_budget=8 * 1024 * 1024):
    """Largest row tile (multiple of 128, <= tm_max) whose double-buffered input
    stays under a fixed VMEM budget, clamped to the padded row count."""
    cap_by_vmem = vmem_budget // max(1, 2 * h * itemsize)      # 2 = double buffering
    cap_by_rows = pl.cdiv(bs, 128) * 128
    tm = min(tm_max, cap_by_vmem, cap_by_rows)
    return max(128, (tm // 128) * 128)


def seqmodel_forward(outs, mask, wp, bp, *, tm=None):
    """Pallas implementation of SeqModel.forward (use_crf_sl=False).

    outs: (B, S, H) encoder output (bf16 or f32) -- fed to the kernel as-is.
    mask: (B, S) bool/int valid-token mask (applied outside the kernel).
    wp, bp: prepared head from prepare_tag_head().
    Returns tag_seq: (B, S) int32 (PyTorch returns int64; int32 is plenty here).
    """
    B, S, H = outs.shape
    Lp, Hw = wp.shape
    assert Hw == H, "head hidden dim mismatch"

    BS = B * S
    if tm is None:
        tm = _pick_row_tile(BS, H, jnp.dtype(wp.dtype).itemsize)
    else:
        tm = max(128, (min(tm, pl.cdiv(BS, 128) * 128) // 128) * 128)
    BS_pad = pl.cdiv(BS, tm) * tm
    grid = (BS_pad // tm,)

    x = outs.reshape(BS, H)
    if x.dtype != wp.dtype:
        x = x.astype(wp.dtype)          # no-op when encoder already emits compute dtype
    if BS_pad != BS:
        x = jnp.pad(x, ((0, BS_pad - BS), (0, 0)))  # padded rows discarded below

    out = pl.pallas_call(
        _tag_kernel,
        out_shape=jax.ShapeDtypeStruct((1, BS_pad), jnp.int32),
        grid_spec=pltpu.PrefetchScalarGridSpec(
            num_scalar_prefetch=0,
            grid=grid,
            in_specs=[
                pl.BlockSpec((tm, H), lambda i: (i, 0)),    # hidden rows (streamed)
                pl.BlockSpec((Lp, H), lambda i: (0, 0)),    # padded weight (resident)
                pl.BlockSpec((Lp, 1), lambda i: (0, 0)),    # padded bias   (resident)
            ],
            out_specs=pl.BlockSpec((1, tm), lambda i: (0, i)),  # lane-dense tag row
        ),
        compiler_params=pltpu.CompilerParams(
            dimension_semantics=("parallel",),          # shard grid across TCs (v7x)
            vmem_limit_bytes=32 * 1024 * 1024,          # safe on v5e/v6e/v7x
        ),
    )(x, wp, bp)

    tag = out[0, :BS].reshape(B, S)
    # mask.long() * tag_seq — trivial fused XLA elementwise, kept out of the kernel.
    return tag * mask.astype(jnp.int32)


def init_params(key, hidden_dim, label1, label2):
    k1, k2, k3, k4 = jax.random.split(key, 4)
    # nn.Linear(hidden_dim, label_size): weight (L, H), bias (L,)
    bound = 1.0 / jnp.sqrt(hidden_dim)
    return {
        "hidden2tag_sl_1_w": jax.random.uniform(k1, (label1, hidden_dim),
                                                minval=-bound, maxval=bound,
                                                dtype=jnp.float32),
        "hidden2tag_sl_1_b": jax.random.uniform(k2, (label1,),
                                                minval=-bound, maxval=bound,
                                                dtype=jnp.float32),
        "hidden2tag_sl_2_w": jax.random.uniform(k3, (label2, hidden_dim),
                                                minval=-bound, maxval=bound,
                                                dtype=jnp.float32),
        "hidden2tag_sl_2_b": jax.random.uniform(k4, (label2,),
                                                minval=-bound, maxval=bound,
                                                dtype=jnp.float32),
    }


if __name__ == "__main__":
    B, S, H = 2, 8, 32          # batch, seq_len, HP_hidden_dim
    L1, L2 = 16, 16             # label_alphabet_1_size, label_alphabet_2_size

    key = jax.random.PRNGKey(0)
    k_params, k_outs = jax.random.split(key)
    params = init_params(k_params, H, L1, L2)

    # Encoder output stand-in (WordSequence not provided) — bf16, fed as-is.
    outs = jax.random.normal(k_outs, (B, S, H), dtype=jnp.bfloat16)

    # Padded-sequence mask: first row full length, second row length 5.
    lengths = jnp.array([S, 5], dtype=jnp.int32)
    mask = (jnp.arange(S)[None, :] < lengths[:, None])   # (B, S) bool

    mode = "model2"
    if mode == "model2":
        w_raw, b_raw = params["hidden2tag_sl_1_w"], params["hidden2tag_sl_1_b"]
        L = L1
    else:
        w_raw, b_raw = params["hidden2tag_sl_2_w"], params["hidden2tag_sl_2_b"]
        L = L2

    # One-time prep (hoisted out of the per-call path).
    wp, bp = prepare_tag_head(w_raw, b_raw, compute_dtype=outs.dtype)

    tag_seq = seqmodel_forward(outs, mask, wp, bp)
    tag_seq = jax.block_until_ready(tag_seq)

    # ---- Pure-JAX reference of the same forward semantics (same bf16 values) ----
    x32 = outs.reshape(B * S, H).astype(jnp.float32)
    w32 = wp[:L].astype(jnp.float32)                     # bf16-quantized weights
    b32 = jnp.asarray(b_raw, jnp.float32)
    ref_logits = x32 @ w32.T + b32                       # (B*S, L)
    ref_tag = jnp.argmax(ref_logits, axis=1).astype(jnp.int32)
    ref_masked = ref_tag.reshape(B, S) * mask.astype(jnp.int32)

    kflat = tag_seq.reshape(-1)
    mflat = mask.reshape(-1)

    # Tags must always be valid labels (padded labels can never win).
    assert bool(jnp.all((kflat >= 0) & (kflat < L))), tag_seq

    exact = (tag_seq == ref_masked).reshape(-1)
    # Any disagreement must be a genuine fp tie (MXU bf16 accumulation order vs
    # the f32 reference): the picked label's logit must equal the row max.
    picked = jnp.take_along_axis(ref_logits, kflat[:, None], axis=1)[:, 0]
    tie_ok = picked >= ref_logits.max(axis=1) - 1e-2
    ok = exact | (mflat & tie_ok)
    assert bool(jnp.all(ok)), (tag_seq, ref_masked)

    print("KERNEL_OK")
</pallas_src>

<mosaic_0001>
module attributes {stable_mosaic.version = 11 : i64} {
  func.func @_tag_kernel(%arg0: i32, %arg1: memref<128x32xbf16, #tpu.memory_space<vmem>>, %arg2: memref<128x32xbf16, #tpu.memory_space<vmem>>, %arg3: memref<128x1xf32, #tpu.memory_space<vmem>>, %arg4: memref<1x128xi32, #tpu.memory_space<vmem>>) attributes {dimension_semantics = [#tpu.dimension_semantics<parallel>], iteration_bounds = array<i64: 1>, scalar_prefetch = 0 : i64, scratch_operands = 0 : i64, tpu.core_type = #tpu.core_type<tc>, window_params = [{transform_indices = @transform_0, window_bounds = array<i64: 128, 32>}, {pipeline_mode = #tpu.pipeline_mode<synchronous>, transform_indices = @transform_1, window_bounds = array<i64: 128, 32>}, {pipeline_mode = #tpu.pipeline_mode<synchronous>, transform_indices = @transform_2, window_bounds = array<i64: 128, 1>}, {transform_indices = @transform_3, window_bounds = array<i64: 1, 128>}]} {
    %c0 = arith.constant 0 : index
    %c0_0 = arith.constant 0 : index
    %0 = vector.load %arg2[%c0, %c0_0] : memref<128x32xbf16, #tpu.memory_space<vmem>>, vector<128x32xbf16>
    %c0_1 = arith.constant 0 : index
    %c0_2 = arith.constant 0 : index
    %1 = vector.load %arg1[%c0_1, %c0_2] : memref<128x32xbf16, #tpu.memory_space<vmem>>, vector<128x32xbf16>
    %cst = arith.constant dense<0.000000e+00> : vector<128x128xf32>
    %2 = tpu.matmul %0, %1, %cst {dimension_numbers = #tpu.dot_dimension_numbers<[1], [1], [0], [0], [0, 0, 1, 0], [], []>} : vector<128x32xbf16>, vector<128x32xbf16>, vector<128x128xf32> -> vector<128x128xf32>
    %c0_3 = arith.constant 0 : index
    %c0_4 = arith.constant 0 : index
    %3 = vector.load %arg3[%c0_3, %c0_4] : memref<128x1xf32, #tpu.memory_space<vmem>>, vector<128x1xf32>
    %4 = vector.broadcast %3 : vector<128x1xf32> to vector<128x128xf32>
    %5 = arith.addf %2, %4 : vector<128x128xf32>
    %cst_5 = arith.constant dense<0xFF800000> : vector<128xf32>
    %6 = vector.multi_reduction <maximumf>, %5, %cst_5 [0] : vector<128x128xf32> to vector<128xf32>
    %7 = vector.shape_cast %6 : vector<128xf32> to vector<1x128xf32>
    %8 = tpu.iota {dimensions = array<i32: 0>} : vector<128x128xi32>
    %9 = vector.broadcast %7 : vector<1x128xf32> to vector<128x128xf32>
    %10 = arith.cmpf oge, %5, %9 : vector<128x128xf32>
    %c128_i32 = arith.constant 128 : i32
    %11 = vector.broadcast %c128_i32 : i32 to vector<128x128xi32>
    %12 = arith.select %10, %8, %11 : vector<128x128xi1>, vector<128x128xi32>
    %cst_6 = arith.constant dense<2147483647> : vector<128xi32>
    %13 = vector.multi_reduction <minsi>, %12, %cst_6 [0] : vector<128x128xi32> to vector<128xi32>
    %14 = vector.shape_cast %13 : vector<128xi32> to vector<1x128xi32>
    %c0_7 = arith.constant 0 : index
    %c0_8 = arith.constant 0 : index
    %15 = vector.load %arg4[%c0_7, %c0_8] : memref<1x128xi32, #tpu.memory_space<vmem>>, vector<1x128xi32>
    tpu.vector_store %arg4[%c0_7, %c0_8], %14 {strides = array<i32>} : memref<1x128xi32, #tpu.memory_space<vmem>>, vector<1x128xi32>,
    return
  }
  func.func @transform_0(%arg0: i32) -> (i32, i32) {
    %c0_i32 = arith.constant 0 : i32
    %c0_i32_0 = arith.constant 0 : i32
    return %arg0, %c0_i32 : i32, i32
  }
  func.func @transform_1(%arg0: i32) -> (i32, i32) {
    %c0_i32 = arith.constant 0 : i32
    %c0_i32_0 = arith.constant 0 : i32
    %c0_i32_1 = arith.constant 0 : i32
    return %c0_i32, %c0_i32_0 : i32, i32
  }
  func.func @transform_2(%arg0: i32) -> (i32, i32) {
    %c0_i32 = arith.constant 0 : i32
    %c0_i32_0 = arith.constant 0 : i32
    %c0_i32_1 = arith.constant 0 : i32
    return %c0_i32, %c0_i32_0 : i32, i32
  }
  func.func @transform_3(%arg0: i32) -> (i32, i32) {
    %c0_i32 = arith.constant 0 : i32
    %c0_i32_0 = arith.constant 0 : i32
    return %c0_i32, %arg0 : i32, i32
  }
}

</mosaic_0001>

<bundles_post_ra>
// kernel: tpu_custom_call.1
= control target key start
LH: loop header
LB: loop body
LE: loop exit
PB: predicated region body
PF: predicated region fallthrough
CT: control target
= control target key end

     0   :  { %vm224_vm0 = vcmask 261120   ;;  %v640_v3 = vmov 0   ;;  %s879_s0 = inlined_call_operand.vmem [shape: bf16[128,32], index: 0, kind: input, shape index: {}]   ;;  %s880_s1 = inlined_call_operand.vmem [shape: bf16[128,32], index: 1, kind: input, shape index: {}]   ;;  %s881_s2 = inlined_call_operand.vmem [shape: f32[128,1], index: 2, kind: input, shape index: {}]   ;;  %s882_s3 = inlined_call_operand.hbm [shape: s32[1,128], index: 3, kind: output, shape index: {}]  }
   0x1   :  { %v602_v0 = vld [vmem:[%s879_s0 + $0x38] sm:$0xff]   ;;  %v603_v1 = vld [vmem:[%s879_s0 + $0x30] sm:$0xff]   ;;  %601 = vset.pattern.permute.xlu1 %v640_v3  ;;  %600 = vset.pattern.permute.xlu0 %v640_v3  ;;  %v604_v4 = vld [vmem:[%s879_s0 + $0x28] sm:$0xff]  }
   0x2   :  { %582 = vmatprep.subr.msk.bf16.mxu0 %vm224_vm0, %v602_v0  ;;  %583 = vmatprep.subr.msk.bf16.mxu1 %vm224_vm0, %v602_v0  ;;  %v271_v2 = vsel %vm224_vm0, %v602_v0, 0  ;;  %v268_v5 = vsel %vm224_vm0, %v603_v1, 0  ;;  %v610_v6 = vld [vmem:[%s880_s1] sm:$0xff]   ;;  %v265_v8 = vsel %vm224_vm0, %v604_v4, 0  ;;  %v50_v10 = vld [vmem:[%s881_s2 + $0x10] sm:$0xff]  ;;  %v51_v12 = vld [vmem:[%s881_s2 + $0x18] sm:$0xff] }
   0x3   :  { %535 = vmatpush3.bf16.xpose.msra.mxu0 %v271_v2  ;;  %574 = vmatpush3.bf16.xpose.msra.mxu1 %v271_v2  ;;  %v611_v7 = vld [vmem:[%s880_s1 + $0x20] sm:$0xff]   ;;  %v49_v13 = vld [vmem:[%s881_s2 + $0x8] sm:$0xff] }
   0x4   :  { %584 = vmatprep.subr.msk.bf16.mxu0 %vm224_vm0, %v603_v1  ;;  %585 = vmatprep.subr.msk.bf16.mxu1 %vm224_vm0, %v603_v1  ;;  %v605_v9 = vld [vmem:[%s879_s0 + $0x20] sm:$0xff]  }
   0x5   :  { %550 = vmatprep.mubr.msk.bf16.mxu0 %vm224_vm0, %v610_v6  ;;  %558 = vmatprep.mubr.msk.bf16.mxu1 %vm224_vm0, %v611_v7  ;;  %v48_v11 = vld [vmem:[%s881_s2] sm:$0xff] }
   0x6   :  { %76 = vperm.xlu1 %601, %v50_v10   ;;  %66 = vperm.xlu0 %600, %v48_v11  }
   0xa   :  { %81 = vperm.xlu1 %601, %v51_v12   ;;  %71 = vperm.xlu0 %600, %v49_v13  }
   0xb   :  { %537 = vmatpush3.bf16.xpose.msra.mxu0 %v268_v5  ;;  %575 = vmatpush3.bf16.xpose.msra.mxu1 %v268_v5 }
   0xc   :  { %586 = vmatprep.subr.msk.bf16.mxu0 %vm224_vm0, %v604_v4  ;;  %587 = vmatprep.subr.msk.bf16.mxu1 %vm224_vm0, %v604_v4 }
  0x13   :  { %539 = vmatpush3.bf16.xpose.msra.mxu0 %v265_v8  ;;  %576 = vmatpush3.bf16.xpose.msra.mxu1 %v265_v8 }
  0x14   :  { %588 = vmatprep.subr.msk.bf16.mxu0 %vm224_vm0, %v605_v9  ;;  %589 = vmatprep.subr.msk.bf16.mxu1 %vm224_vm0, %v605_v9 }
  0x15   :  { %8 = vsyncpa [#allocation3], 0  ;;  %v53_v14 = vld [vmem:[%s881_s2 + $0x28] sm:$0xff]  ;;  %v52_v15 = vld [vmem:[%s881_s2 + $0x20] sm:$0xff]  ;;  %v262_v16 = vsel %vm224_vm0, %v605_v9, 0 }
  0x16   :  { %v606_v17 = vld [vmem:[%s879_s0 + $0x18] sm:$0xff]   ;;  %91 = vperm.xlu1 %601, %v53_v14   ;;  %86 = vperm.xlu0 %600, %v52_v15   ;;  %v54_v19 = vld [vmem:[%s881_s2 + $0x30] sm:$0xff]  ;;  %v57_v20 = vld [vmem:[%s881_s2 + $0x48] sm:$0xff] }
  0x17   :  { %v55_v18 = vld [vmem:[%s881_s2 + $0x38] sm:$0xff]  ;;  %v56_v21 = vld [vmem:[%s881_s2 + $0x40] sm:$0xff]  ;;  %v259_v22 = vsel %vm224_vm0, %v606_v17, 0  ;;  %v607_v23 = vld [vmem:[%s879_s0 + $0x10] sm:$0xff]  }
  0x18   :  { %v59_v24 = vld [vmem:[%s881_s2 + $0x58] sm:$0xff]  ;;  %v58_v25 = vld [vmem:[%s881_s2 + $0x50] sm:$0xff]  ;;  %v61_v26 = vld [vmem:[%s881_s2 + $0x68] sm:$0xff]  ;;  %v256_v28 = vsel %vm224_vm0, %v607_v23, 0 }
  0x19   :  { %v60_v27 = vld [vmem:[%s881_s2 + $0x60] sm:$0xff]  ;;  %v608_v29 = vld [vmem:[%s879_s0 + $0x8] sm:$0xff]   ;;  %v63_v30 = vld [vmem:[%s881_s2 + $0x78] sm:$0xff] }
  0x1a   :  { %101 = vperm.xlu1 %601, %v55_v18   ;;  %96 = vperm.xlu0 %600, %v54_v19   ;;  %v62_v31 = vld [vmem:[%s881_s2 + $0x70] sm:$0xff]  ;;  %v253_v32 = vsel %vm224_vm0, %v608_v29, 0  ;;  %v609_v33 = vld [vmem:[%s879_s0] sm:$0xff]   ;;  %v612_v35 = vld [vmem:[%s880_s1 + $0x8] sm:$0xff]  }
  0x1b   :  { %541 = vmatpush3.bf16.xpose.msra.mxu0 %v262_v16  ;;  %577 = vmatpush3.bf16.xpose.msra.mxu1 %v262_v16  ;;  %v250_v34 = vsel %vm224_vm0, %v609_v33, 0  ;;  %v613_v36 = vld [vmem:[%s880_s1 + $0x28] sm:$0xff]   ;;  %v614_v37 = vld [vmem:[%s880_s1 + $0x10] sm:$0xff]   ;;  %v616_v39 = vld [vmem:[%s880_s1 + $0x18] sm:$0xff]  }
  0x1c   :  { %590 = vmatprep.subr.msk.bf16.mxu0 %vm224_vm0, %v606_v17  ;;  %591 = vmatprep.subr.msk.bf16.mxu1 %vm224_vm0, %v606_v17  ;;  %v615_v38 = vld [vmem:[%s880_s1 + $0x30] sm:$0xff]   ;;  %v617_v40 = vld [vmem:[%s880_s1 + $0x38] sm:$0xff]   ;;  %s641_s1 = smov [#allocation2]  }
  0x1d   :  { %s486_s20 = sshll.u32 %s641_s1, 4  ;;  %s487_s20 = int_to_ptr.vmem [resolvable:$true] %s486_s20 }
  0x1e   :  { %111 = vperm.xlu1 %601, %v57_v20   ;;  %106 = vperm.xlu0 %600, %v56_v21   ;;  %s618_s21 = scalar_lea.vmem %s487_s20, 16  ;;  %s622_s22 = scalar_lea.vmem %s487_s20, 32 }
  0x1f   :  { %p619_p0 = scmp.ne.s32.totalorder %s487_s20, %s618_s21  ;;  %p623_p1 = scmp.lt.s32.totalorder %s487_s20, %s487_s20 }
  0x20   :  { %p624_p2 = scmp.lt.s32.totalorder %s622_s22, %s618_s21 }
  0x22   :  { %121 = vperm.xlu1 %601, %v59_v24   ;;  %116 = vperm.xlu0 %600, %v58_v25   ;;  %p625_p3 = por %p624_p2, %p623_p1 }
  0x23   :  { %543 = vmatpush3.bf16.xpose.msra.mxu0 %v259_v22  ;;  %578 = vmatpush3.bf16.xpose.msra.mxu1 %v259_v22 }
  0x24   :  { %592 = vmatprep.subr.msk.bf16.mxu0 %vm224_vm0, %v607_v23  ;;  %593 = vmatprep.subr.msk.bf16.mxu1 %vm224_vm0, %v607_v23  ;;  %p626_p4 = pnand %p625_p3, %p619_p0 }
  0x26   :  { %131 = vperm.xlu1 %601, %v61_v26   ;;  %126 = vperm.xlu0 %600, %v60_v27  }
  0x2a   :  { %141 = vperm.xlu1 %601, %v63_v30   ;;  %136 = vperm.xlu0 %600, %v62_v31  }
  0x2b   :  { %545 = vmatpush3.bf16.xpose.msra.mxu0 %v256_v28  ;;  %579 = vmatpush3.bf16.xpose.msra.mxu1 %v256_v28 }
  0x2c   :  { %594 = vmatprep.subr.msk.bf16.mxu0 %vm224_vm0, %v608_v29  ;;  %595 = vmatprep.subr.msk.bf16.mxu1 %vm224_vm0, %v608_v29 }
  0x33   :  { %547 = vmatpush3.bf16.xpose.msra.mxu0 %v253_v32  ;;  %580 = vmatpush3.bf16.xpose.msra.mxu1 %v253_v32 }
  0x34   :  { %596 = vmatprep.subr.msk.bf16.mxu0 %vm224_vm0, %v609_v33  ;;  %597 = vmatprep.subr.msk.bf16.mxu1 %vm224_vm0, %v609_v33 }
  0x3b   :  { %549 = vmatpush3.bf16.xpose.msra.mxu0 %v250_v34  ;;  %581 = vmatpush3.bf16.xpose.msra.mxu1 %v250_v34 }
  0x42   :  { %551 = vmatmul.mubr.msk.bf16.vlgmr.msra.gmra.mxu0 %vm224_vm0, %v612_v35  ;;  %559 = vmatmul.mubr.msk.bf16.vlgmr.msra.gmra.mxu1 %vm224_vm0, %v613_v36 }
  0x43   :  { %554 = vmatprep.mubr.msk.bf16.mxu0 %vm224_vm0, %v614_v37  ;;  %562 = vmatprep.mubr.msk.bf16.mxu1 %vm224_vm0, %v615_v38 }
  0x4a   :  { %555 = vmatmul.mubr.msk.bf16.gmra.mxu0 %vm224_vm0, %v616_v39  ;;  %563 = vmatmul.mubr.msk.bf16.gmra.mxu1 %vm224_vm0, %v617_v40  ;;  %v391_v40 = vlaneseq }
  0x81   :  { %v77_v41 = vpop.permute.xlu1 %76  ;;  %v67_v42 = vpop.permute.xlu0 %66 }
  0x85   :  { %v82_v43 = vpop.permute.xlu1 %81  ;;  %v72_v44 = vpop.permute.xlu0 %71 }
  0x91   :  { %v92_v45 = vpop.permute.xlu1 %91  ;;  %v87_v46 = vpop.permute.xlu0 %86 }
  0x95   :  { %v102_v47 = vpop.permute.xlu1 %101  ;;  %v97_v48 = vpop.permute.xlu0 %96 }
  0x99   :  { %v112_v49 = vpop.permute.xlu1 %111  ;;  %v107_v50 = vpop.permute.xlu0 %106 }
  0x9d   :  { %v122_v55 = vpop.permute.xlu1 %121  ;;  %v117_v58 = vpop.permute.xlu0 %116 }
  0xa1   :  { %v132_v63 = vpop.permute.xlu1 %131  ;;  %v127_v4 = vpop.permute.xlu0 %126 }
  0xa5   :  { %v142_v20 = vpop.permute.xlu1 %141  ;;  %v137_v24 = vpop.permute.xlu0 %136 }
 0x102   :  { %v552_v51 = vpop.f32.mrf.mxu0  ;;  %v560_v52 = vpop.f32.mrf.mxu1 }
 0x103   :  { %v792_v1 = vadd.f32 %v552_v51, %v77_v41  ;;  %v806_v13 = vadd.f32 %v560_v52, %v117_v58 }
 0x104   :  { %v307_v53 = vpop.f32.mrf.mxu0  ;;  %v339_v54 = vpop.f32.mrf.mxu1 }
 0x105   :  { %v794_v5 = vadd.f32 %v307_v53, %v67_v42  ;;  %v808_v14 = vadd.f32 %v339_v54, %v107_v50 }
 0x106   :  { %v553_v56 = vpop.f32.mrf.mxu0  ;;  %v561_v57 = vpop.f32.mrf.mxu1 }
 0x107   :  { %v800_v10 = vadd.f32 %v553_v56, %v82_v43  ;;  %v810_v16 = vadd.f32 %v561_v57, %v122_v55  ;;  %v392_v43 = vshrl.u32 %v391_v40, 7 }
 0x108   :  { %v310_v59 = vpop.f32.mrf.mxu0  ;;  %v342_v60 = vpop.f32.mrf.mxu1 }
 0x109   :  { %v812_v17 = vadd.f32 %v310_v59, %v72_v44  ;;  %v818_v21 = vadd.f32 %v342_v60, %v112_v49  ;;  %v395_v49 = vadd.s32 24, %v392_v43  ;;  %v396_v50 = vadd.s32 32, %v392_v43 }
 0x10a   :  { %v556_v61 = vpop.f32.mrf.mxu0  ;;  %v564_v62 = vpop.f32.mrf.mxu1  ;;  %v397_v51 = vadd.s32 40, %v392_v43  ;;  %v398_v52 = vadd.s32 48, %v392_v43  ;;  %v399_v53 = vadd.s32 56, %v392_v43  ;;  %v400_v54 = vadd.s32 64, %v392_v43 }
 0x10b   :  { %v790_v0 = vadd.f32 %v556_v61, %v97_v48  ;;  %v827_v29 = vadd.f32 %v564_v62, %v137_v24  ;;  %v394_v48 = vadd.s32 16, %v392_v43  ;;  %v401_v56 = vadd.s32 72, %v392_v43 }
 0x10c   :  { %v323_v2 = vpop.f32.mrf.mxu0  ;;  %v355_v3 = vpop.f32.mrf.mxu1  ;;  %v402_v57 = vadd.s32 80, %v392_v43  ;;  %v403_v58 = vadd.s32 88, %v392_v43  ;;  %v404_v59 = vadd.s32 96, %v392_v43  ;;  %v405_v60 = vadd.s32 104, %v392_v43 }
 0x10d   :  { %v796_v6 = vadd.f32 %v323_v2, %v87_v46  ;;  %v372_v7 = vmax.f32 %v792_v1, %v790_v0  ;;  %v356_v30 = vadd.f32 %v355_v3, %v127_v4  ;;  %v393_v46 = vadd.s32 8, %v392_v43 }
 0x10e   :  { %v557_v8 = vpop.f32.mrf.mxu0  ;;  %v565_v9 = vpop.f32.mrf.mxu1  ;;  %v406_v61 = vadd.s32 112, %v392_v43  ;;  %v407_v62 = vadd.s32 120, %v392_v43 }
 0x10f   :  { %v370_v11 = vmax.f32 %v794_v5, %v796_v6  ;;  %v804_v12 = vadd.f32 %v557_v8, %v102_v47  ;;  %v376_v22 = vmax.f32 %v372_v7, %v806_v13  ;;  %v822_v26 = vadd.f32 %v565_v9, %v142_v20 }
 0x110   :  { %v326_v15 = vpop.f32.mrf.mxu0  ;;  %v358_v23 = vpop.f32.mrf.mxu1 }
 0x111   :  { %v373_v18 = vmax.f32 %v800_v10, %v804_v12  ;;  %v816_v19 = vadd.f32 %v326_v15, %v92_v45  ;;  %v374_v25 = vmax.f32 %v370_v11, %v808_v14  ;;  %v359_v32 = vadd.f32 %v358_v23, %v132_v63 }
 0x112   :  { %v380_v34 = vmax.f32 %v376_v22, %v827_v29 }
 0x113   :  { %v377_v27 = vmax.f32 %v373_v18, %v810_v16  ;;  %v371_v28 = vmax.f32 %v812_v17, %v816_v19  ;;  %v378_v35 = vmax.f32 %v374_v25, %v356_v30 }
 0x115   :  { %v381_v31 = vmax.f32 %v377_v27, %v822_v26  ;;  %v375_v33 = vmax.f32 %v371_v28, %v818_v21 }
 0x117   :  { %v379_v36 = vmax.f32 %v375_v33, %v359_v32  ;;  %v383_v37 = vmax.f32 %v380_v34, %v381_v31 }
 0x119   :  { %v382_v38 = vmax.f32 %v378_v35, %v379_v36 }
 0x11b   :  { %v384_v39 = vmax.f32 %v382_v38, %v383_v37 }
 0x11d   :  { %v385_v41 = vrot.slane %v384_v39, 4 }
 0x11f   :  { %v386_v42 = vmax.f32 %v384_v39, %v385_v41 }
 0x121   :  { %v387_v44 = vrot.slane %v386_v42, 2 }
 0x123   :  { %v388_v45 = vmax.f32 %v386_v42, %v387_v44 }
 0x125   :  { %v389_v47 = vrot.slane %v388_v45, 1 }
 0x127   :  { %v390_v55 = vmax.f32 %v388_v45, %v389_v47 }
 0x129   :  { %vm408_vm1 = vcmp.ge.f32.partialorder %v794_v5, %v390_v55  ;;  %vm409_vm2 = vcmp.ge.f32.partialorder %v812_v17, %v390_v55  ;;  %vm410_vm3 = vcmp.ge.f32.partialorder %v792_v1, %v390_v55  ;;  %vm411_vm4 = vcmp.ge.f32.partialorder %v800_v10, %v390_v55 }
 0x12a   :  { %vm412_vm5 = vcmp.ge.f32.partialorder %v796_v6, %v390_v55  ;;  %vm413_vm6 = vcmp.ge.f32.partialorder %v816_v19, %v390_v55  ;;  %vm414_vm7 = vcmp.ge.f32.partialorder %v790_v0, %v390_v55  ;;  %vm415_vm8 = vcmp.ge.f32.partialorder %v804_v12, %v390_v55 }
 0x12b   :  { %vm416_vm9 = vcmp.ge.f32.partialorder %v808_v14, %v390_v55  ;;  %vm417_vm10 = vcmp.ge.f32.partialorder %v818_v21, %v390_v55  ;;  %vm418_vm11 = vcmp.ge.f32.partialorder %v806_v13, %v390_v55  ;;  %vm419_vm12 = vcmp.ge.f32.partialorder %v810_v16, %v390_v55 }
 0x12c   :  { %vm420_vm13 = vcmp.ge.f32.partialorder %v356_v30, %v390_v55  ;;  %vm421_vm14 = vcmp.ge.f32.partialorder %v359_v32, %v390_v55  ;;  %vm422_vm15 = vcmp.ge.f32.partialorder %v827_v29, %v390_v55  ;;  %vm423_vm0 = vcmp.ge.f32.partialorder %v822_v26, %v390_v55 }
 0x12d   :  { %v424_v63 = vsel %vm408_vm1, %v392_v43, 128  ;;  %v425_v2 = vsel %vm409_vm2, %v393_v46, 128  ;;  %v426_v3 = vsel %vm410_vm3, %v394_v48, 128  ;;  %v427_v4 = vsel %vm411_vm4, %v395_v49, 128 }
 0x12e   :  { %v428_v7 = vsel %vm412_vm5, %v396_v50, 128  ;;  %v429_v8 = vsel %vm413_vm6, %v397_v51, 128  ;;  %v430_v9 = vsel %vm414_vm7, %v398_v52, 128  ;;  %v431_v5 = vsel %vm415_vm8, %v399_v53, 128 }
 0x12f   :  { %v432_v11 = vsel %vm416_vm9, %v400_v54, 128  ;;  %v433_v1 = vsel %vm417_vm10, %v401_v56, 128  ;;  %v434_v10 = vsel %vm418_vm11, %v402_v57, 128  ;;  %v435_v6 = vsel %vm419_vm12, %v403_v58, 128 }
 0x130   :  { %v436_v15 = vsel %vm420_vm13, %v404_v59, 128  ;;  %v437_v0 = vsel %vm421_vm14, %v405_v60, 128  ;;  %v438_v12 = vsel %vm422_vm15, %v406_v61, 128  ;;  %v439_v14 = vsel %vm423_vm0, %v407_v62, 128 }
 0x131   :  { %vm440_vm1 = vcmp.lt.s32.totalorder %v424_v63, %v428_v7  ;;  %vm442_vm2 = vcmp.lt.s32.totalorder %v425_v2, %v429_v8  ;;  %vm444_vm3 = vcmp.lt.s32.totalorder %v426_v3, %v430_v9  ;;  %vm446_vm4 = vcmp.lt.s32.totalorder %v427_v4, %v431_v5 }
 0x132   :  { %v441_v17 = vsel %vm440_vm1, %v424_v63, %v428_v7  ;;  %v443_v13 = vsel %vm442_vm2, %v425_v2, %v429_v8  ;;  %v445_v18 = vsel %vm444_vm3, %v426_v3, %v430_v9  ;;  %v447_v19 = vsel %vm446_vm4, %v427_v4, %v431_v5 }
 0x133   :  { %vm448_vm5 = vcmp.lt.s32.totalorder %v441_v17, %v432_v11  ;;  %vm450_vm6 = vcmp.lt.s32.totalorder %v443_v13, %v433_v1  ;;  %vm452_vm7 = vcmp.lt.s32.totalorder %v445_v18, %v434_v10  ;;  %vm454_vm8 = vcmp.lt.s32.totalorder %v447_v19, %v435_v6 }
 0x134   :  { %v449_v16 = vsel %vm448_vm5, %v441_v17, %v432_v11  ;;  %v451_v20 = vsel %vm450_vm6, %v443_v13, %v433_v1  ;;  %v453_v21 = vsel %vm452_vm7, %v445_v18, %v434_v10  ;;  %v455_v22 = vsel %vm454_vm8, %v447_v19, %v435_v6 }
 0x135   :  { %vm456_vm9 = vcmp.lt.s32.totalorder %v449_v16, %v436_v15  ;;  %vm458_vm10 = vcmp.lt.s32.totalorder %v451_v20, %v437_v0  ;;  %vm460_vm11 = vcmp.lt.s32.totalorder %v453_v21, %v438_v12  ;;  %vm462_vm12 = vcmp.lt.s32.totalorder %v455_v22, %v439_v14 }
 0x136   :  { %v457_v23 = vsel %vm456_vm9, %v449_v16, %v436_v15  ;;  %v459_v24 = vsel %vm458_vm10, %v451_v20, %v437_v0  ;;  %v461_v25 = vsel %vm460_vm11, %v453_v21, %v438_v12  ;;  %v463_v26 = vsel %vm462_vm12, %v455_v22, %v439_v14 }
 0x137   :  { %vm464_vm13 = vcmp.lt.s32.totalorder %v457_v23, %v459_v24  ;;  %vm466_vm14 = vcmp.lt.s32.totalorder %v461_v25, %v463_v26 }
 0x138   :  { %v465_v27 = vsel %vm464_vm13, %v457_v23, %v459_v24  ;;  %v467_v28 = vsel %vm466_vm14, %v461_v25, %v463_v26 }
 0x139   :  { %vm468_vm15 = vcmp.lt.s32.totalorder %v465_v27, %v467_v28 }
 0x13a   :  { %v469_v29 = vsel %vm468_vm15, %v465_v27, %v467_v28 }
 0x13b   :  { %v470_v30 = vrot.slane %v469_v29, 4 }
 0x13d   :  { %vm471_vm0 = vcmp.lt.s32.totalorder %v469_v29, %v470_v30 }
 0x13e   :  { %v472_v31 = vsel %vm471_vm0, %v469_v29, %v470_v30 }
 0x13f   :  { %v473_v32 = vrot.slane %v472_v31, 2 }
 0x141   :  { %vm474_vm1 = vcmp.lt.s32.totalorder %v472_v31, %v473_v32 }
 0x142   :  { %v475_v33 = vsel %vm474_vm1, %v472_v31, %v473_v32 }
 0x143   :  { %v476_v34 = vrot.slane %v475_v33, 1 }
 0x145   :  { %vm477_vm2 = vcmp.lt.s32.totalorder %v475_v33, %v476_v34 }
 0x146   :  { %v478_v35 = vsel %vm477_vm2, %v475_v33, %v476_v34 }
 0x147   :  { %479 = vst [vmem:[#allocation2] sm:$0x1] %v478_v35 }
 0x148   :  { %629 = shalt.err (!%p626_p4)
}
 0x149   :  { %489 = dma.vmem_to_hbm [thread:$0]  %s487_s20, 16, %s882_s3, [#allocation3]  }
 0x14a   :  { %638 = dma.done.wait [#allocation3], 16  }
 0x14b   :  { %639 = vsyncadd [#allocation3], 4294967280 }
 0x14c   :  { %493 = vsyncpa [#allocation3], 1 }

</bundles_post_ra>
